<compile_context>
chip_gen: v7x
topology: tpu7x:2x2x1
jax: 0.10.0
libtpu: 0.0.40
codegen_flags: <defaults>
</compile_context>

<pallas_src>
import functools

import jax
import jax.numpy as jnp
from jax.experimental import pallas as pl
from jax.experimental.pallas import tpu as pltpu


def _round_up(x: int, m: int) -> int:
    return (x + m - 1) // m * m


def _patch_proj_kernel(patches_ref, w_ref, pos_ref, out_ref):
    # patches_ref: (tile_m, Kp) bf16   w_ref: (Kp, E) bf16  (VMEM-resident)
    # pos_ref:     (tile_m, E) f32     (reused across the inner batch axis)
    # out_ref:     (tile_m, E) out_dtype
    proj = jnp.dot(patches_ref[...], w_ref[...],
                   preferred_element_type=jnp.float32)
    out_ref[...] = (proj + pos_ref[...]).astype(out_ref.dtype)


def patch_embedding(x, weight, bias, cls_token, positions, patch_size,
                    compute_dtype=jnp.bfloat16, out_dtype=jnp.float32,
                    max_tile_m=512):
    """x: (B, C, H, W) f32.  Returns (B, num_patches + 1, emb) in out_dtype."""
    B, C, H, W = x.shape
    P = patch_size
    gh, gw = H // P, W // P
    N = gh * gw
    E = weight.shape[0]
    K = C * P * P
    SEQ = N + 1

    # Conv2d stride-P semantics: border pixels not covered by a patch drop.
    if H != gh * P or W != gw * P:
        x = x[:, :, :gh * P, :gw * P]

    # --- im2col (wrapper-side, one copy-transpose).  k flattened in
    # (c, kh, kw) order to match the Conv2d weight flatten.  Cast to bf16
    # before any padding so pad zeros are never converted.
    patches = x.reshape(B, C, gh, P, gw, P).transpose(0, 2, 4, 1, 3, 5)
    patches = patches.reshape(B, N, K).astype(compute_dtype)

    # Lane-align the contraction dim for full-width MXU passes.
    K_pad = _round_up(K, 128)

    # --- M tiling over the per-batch sequence (cls slot + N patches).
    nt = pl.cdiv(SEQ, max_tile_m)
    if B * nt < 2 and SEQ >= 32:
        nt = 2                 # v7x: give both TensorCores a grid step
    if nt == 1:
        tile_m = SEQ           # full-dim block: no M padding, no output slice
    else:
        tile_m = _round_up(pl.cdiv(SEQ, nt), 8)
    m_pad = nt * tile_m

    # Patches matrix per batch: row 0 is the (zero) cls slot, rows 1..N are
    # the im2col patches, tail rows are zero padding.
    patches = jnp.pad(patches, ((0, 0), (1, m_pad - 1 - N), (0, K_pad - K)))

    # Conv weight (E, C, P, P) -> (K, E) so conv == patches @ w_mat.
    w_mat = weight.reshape(E, K).T.astype(compute_dtype)
    if K_pad != K:
        w_mat = jnp.pad(w_mat, ((0, K_pad - K), (0, 0)))

    # Per-position additive table (f32), shared across the batch:
    #   row 0      = cls_token + positions[0]        (no conv bias)
    #   rows 1..N  = conv_bias + positions[1:]
    pos_tab = jnp.concatenate(
        [cls_token.reshape(1, E) + positions[0:1, :],
         positions[1:, :] + bias[None, :]], axis=0)
    if m_pad != SEQ:
        pos_tab = jnp.pad(pos_tab, ((0, m_pad - SEQ), (0, 0)))

    itm = jnp.dtype(compute_dtype).itemsize
    otm = jnp.dtype(out_dtype).itemsize
    cost = pl.CostEstimate(
        flops=2 * B * m_pad * K_pad * E,
        transcendentals=0,
        bytes_accessed=(B * m_pad * K_pad * itm      # patches (streamed)
                        + K_pad * E * itm            # weight (fetched once)
                        + m_pad * E * 4              # pos table (fetched once)
                        + B * m_pad * E * otm),      # output
    )

    grid_spec = pltpu.PrefetchScalarGridSpec(
        num_scalar_prefetch=0,
        # B innermost: weight / pos block indices are constant across it,
        # so those tiles are DMA'd once and reused for every batch.
        grid=(nt, B),
        in_specs=[
            pl.BlockSpec((None, tile_m, K_pad), lambda t, b: (b, t, 0)),
            pl.BlockSpec((K_pad, E), lambda t, b: (0, 0)),
            pl.BlockSpec((tile_m, E), lambda t, b: (t, 0)),
        ],
        out_specs=pl.BlockSpec((None, tile_m, E), lambda t, b: (b, t, 0)),
    )

    out = pl.pallas_call(
        _patch_proj_kernel,
        out_shape=jax.ShapeDtypeStruct((B, m_pad, E), out_dtype),
        grid_spec=grid_spec,
        compiler_params=pltpu.CompilerParams(
            dimension_semantics=("parallel", "parallel")),
        cost_estimate=cost,
    )(patches, w_mat, pos_tab)

    if m_pad != SEQ:
        out = out[:, :SEQ, :]
    return out


def _reference(x, weight, bias, cls_token, positions, patch_size):
    """Plain-JAX f32 reference matching the PyTorch forward."""
    B, C, H, W = x.shape
    P = patch_size
    gh, gw = H // P, W // P
    N = gh * gw
    E = weight.shape[0]
    K = C * P * P
    patches = x.reshape(B, C, gh, P, gw, P).transpose(0, 2, 4, 1, 3, 5)
    patches = patches.reshape(B, N, K)
    proj = patches @ weight.reshape(E, K).T + bias                # (B, N, E)
    cls = jnp.broadcast_to(cls_token.reshape(1, 1, E), (B, 1, E))
    return jnp.concatenate([cls, proj], axis=1) + positions[None]


if __name__ == "__main__":
    # Small shapes consistent with the module: emb_size = C * P^2.
    # E = K = 256 (multiples of 128 -> lane-dense blocks, unmasked stores).
    B, C, IMG, P = 2, 4, 32, 8
    E = C * P * P                 # 256
    N = (IMG // P) ** 2           # 16
    SEQ = N + 1                   # 17

    key = jax.random.PRNGKey(0)
    kx, kw, kb, kc, kp = jax.random.split(key, 5)

    x = jax.random.normal(kx, (B, C, IMG, IMG), dtype=jnp.float32)
    conv_w = jax.random.normal(kw, (E, C, P, P), dtype=jnp.float32) * 0.02
    conv_b = jax.random.normal(kb, (E,), dtype=jnp.float32) * 0.02
    cls_token = jax.random.normal(kc, (1, 1, E), dtype=jnp.float32)
    positions = jax.random.normal(kp, (SEQ, E), dtype=jnp.float32)

    fwd = jax.jit(functools.partial(patch_embedding, patch_size=P))
    out = jax.block_until_ready(fwd(x, conv_w, conv_b, cls_token, positions))

    ref = _reference(x, conv_w, conv_b, cls_token, positions, P)
    assert out.shape == (B, SEQ, E), out.shape
    max_err = float(jnp.max(jnp.abs(out - ref)))
    # bf16 MXU inputs with f32 accumulation vs the pure-f32 reference.
    assert max_err < 5e-2, f"mismatch vs reference: max_err={max_err}"

    print("KERNEL_OK")
</pallas_src>

<mosaic_0001>
module attributes {stable_mosaic.version = 11 : i64} {
  func.func @_patch_proj_kernel(%arg0: i32, %arg1: i32, %arg2: memref<1x17x256xbf16, #tpu.memory_space<vmem>>, %arg3: memref<256x256xbf16, #tpu.memory_space<vmem>>, %arg4: memref<17x256xf32, #tpu.memory_space<vmem>>, %arg5: memref<1x17x256xf32, #tpu.memory_space<vmem>>) attributes {dimension_semantics = [#tpu.dimension_semantics<parallel>, #tpu.dimension_semantics<parallel>], iteration_bounds = array<i64: 1, 2>, scalar_prefetch = 0 : i64, scratch_operands = 0 : i64, tpu.core_type = #tpu.core_type<tc>, window_params = [{transform_indices = @transform_0, window_bounds = array<i64: 1, 17, 256>}, {pipeline_mode = #tpu.pipeline_mode<synchronous>, transform_indices = @transform_1, window_bounds = array<i64: 256, 256>}, {transform_indices = @transform_2, window_bounds = array<i64: 17, 256>}, {transform_indices = @transform_3, window_bounds = array<i64: 1, 17, 256>}]} {
    %c0 = arith.constant 0 : index
    %c0_0 = arith.constant 0 : index
    %c0_1 = arith.constant 0 : index
    %0 = vector.load %arg2[%c0, %c0_0, %c0_1] : memref<1x17x256xbf16, #tpu.memory_space<vmem>>, vector<1x17x256xbf16>
    %1 = vector.shape_cast %0 : vector<1x17x256xbf16> to vector<17x256xbf16>
    %c0_2 = arith.constant 0 : index
    %c0_3 = arith.constant 0 : index
    %2 = vector.load %arg3[%c0_2, %c0_3] : memref<256x256xbf16, #tpu.memory_space<vmem>>, vector<256x256xbf16>
    %cst = arith.constant dense<0.000000e+00> : vector<17x256xf32>
    %3 = tpu.matmul %1, %2, %cst {dimension_numbers = #tpu.dot_dimension_numbers<[1], [0], [0], [1], [0, 0, 1, 1], [], []>} : vector<17x256xbf16>, vector<256x256xbf16>, vector<17x256xf32> -> vector<17x256xf32>
    %c0_4 = arith.constant 0 : index
    %c0_5 = arith.constant 0 : index
    %4 = vector.load %arg4[%c0_4, %c0_5] : memref<17x256xf32, #tpu.memory_space<vmem>>, vector<17x256xf32>
    %5 = arith.addf %3, %4 : vector<17x256xf32>
    %c0_6 = arith.constant 0 : index
    %c0_7 = arith.constant 0 : index
    %c0_8 = arith.constant 0 : index
    %6 = vector.load %arg5[%c0_6, %c0_7, %c0_8] : memref<1x17x256xf32, #tpu.memory_space<vmem>>, vector<1x17x256xf32>
    %7 = vector.shape_cast %6 : vector<1x17x256xf32> to vector<17x256xf32>
    %8 = vector.shape_cast %5 : vector<17x256xf32> to vector<1x17x256xf32>
    tpu.vector_store %arg5[%c0_6, %c0_7, %c0_8], %8 {strides = array<i32>} : memref<1x17x256xf32, #tpu.memory_space<vmem>>, vector<1x17x256xf32>,
    return
  }
  func.func @transform_0(%arg0: i32, %arg1: i32) -> (i32, i32, i32) {
    %c0_i32 = arith.constant 0 : i32
    %c0_i32_0 = arith.constant 0 : i32
    return %arg1, %arg0, %c0_i32 : i32, i32, i32
  }
  func.func @transform_1(%arg0: i32, %arg1: i32) -> (i32, i32) {
    %c0_i32 = arith.constant 0 : i32
    %c0_i32_0 = arith.constant 0 : i32
    %c0_i32_1 = arith.constant 0 : i32
    return %c0_i32, %c0_i32_0 : i32, i32
  }
  func.func @transform_2(%arg0: i32, %arg1: i32) -> (i32, i32) {
    %c0_i32 = arith.constant 0 : i32
    %c0_i32_0 = arith.constant 0 : i32
    return %arg0, %c0_i32 : i32, i32
  }
  func.func @transform_3(%arg0: i32, %arg1: i32) -> (i32, i32, i32) {
    %c0_i32 = arith.constant 0 : i32
    %c0_i32_0 = arith.constant 0 : i32
    return %arg1, %arg0, %c0_i32 : i32, i32, i32
  }
}

</mosaic_0001>

<bundles_post_ra>
// kernel: patch_embedding.1
= control target key start
LH: loop header
LB: loop body
LE: loop exit
PB: predicated region body
PF: predicated region fallthrough
CT: control target
= control target key end

     0   :  { %s827_s12 = smov 0   ;;  %s829_s13 = smov 0   ;;  %s993_s0 = inlined_call_operand.vmem [shape: bf16[2,17,256], index: 0, kind: input, shape index: {}]   ;;  %s994_s1 = inlined_call_operand.vmem [shape: bf16[256,256], index: 1, kind: input, shape index: {}]   ;;  %s995_s2 = inlined_call_operand.vmem [shape: f32[17,256], index: 2, kind: input, shape index: {}]   ;;  %s996_s3 = inlined_call_operand.vmem [shape: f32[2,17,256], index: 3, kind: output, shape index: {}]  }
   0x1   :  { %s831_s14 = smov 0  }
   0x2 LB: > { %s22_s15 = sadd.s32 1, %s801_s13  ;;  %p631_p0 = scmp.ge.s32.totalorder %s805_s14, 1  ;;  %s805_s14 = sphi %s831_s14, %s13_s14   ;;  %s801_s13 = sphi %s829_s13, %s998_s13   ;;  %s797_s12 = sphi %s827_s12, %s997_s12  }
   0x3   : > { %p23_p1 = scmp.ge.s32.totalorder %s22_s15, 2  ;;  %p171_p2 = scmp.lt.s32.totalorder %s805_s14, 3 }
   0x5   : > { %s1000_s15 = smov (%p23_p1, %s22_s15), 0  ;;  %p172_p3 = pnand %p631_p0, %p171_p2 }
   0x6   : > { %v730_v0 = vld [vmem:[%s994_s1 + $0x4] ss:$8 sps:$4 sm:$0xff] (!%p172_p3)   ;;  %v732_v1 = vld [vmem:[%s994_s1] ss:$8 sps:$4 sm:$0xff] (!%p172_p3)   ;;  %v733_v2 = vld [vmem:[%s994_s1 + $0x14] ss:$8 sps:$4 sm:$0xff] (!%p172_p3)  }
   0x7   : > { %175 = sbr.rel (%p172_p3) target bundleno = 289 (0x121), region = 32  ;;  %458 = vmatprep.subr.bf16.mxu0 (!%p172_p3), %v730_v0  ;;  %672 = vmatprep.subr.bf16.mxu1 (!%p172_p3), %v730_v0  ;;  %v735_v3 = vld [vmem:[%s994_s1 + $0x10] ss:$8 sps:$4 sm:$0xff] (!%p172_p3)   ;;  %v736_v4 = vld [vmem:[%s994_s1 + $0x24] ss:$8 sps:$4 sm:$0xff] (!%p172_p3)   ;;  %p212_p4 = scmp.lt.s32.totalorder (!%p172_p3), %s797_s12, 1 }
   0x8   : > { %459 = vmatpush1.bf16.msra.mxu0 (!%p172_p3), %v732_v1  ;;  %688 = vmatpush1.bf16.msra.mxu1 (!%p172_p3), %v732_v1  ;;  %v738_v5 = vld [vmem:[%s994_s1 + $0x20] ss:$8 sps:$4 sm:$0xff] (!%p172_p3)   ;;  %v739_v6 = vld [vmem:[%s994_s1 + $0x34] ss:$8 sps:$4 sm:$0xff] (!%p172_p3)   ;;  %v741_v7 = vld [vmem:[%s994_s1 + $0x30] ss:$8 sps:$4 sm:$0xff] (!%p172_p3)  }
   0x9   : > { %460 = vmatprep.subr.bf16.mxu0 (!%p172_p3), %v733_v2  ;;  %673 = vmatprep.subr.bf16.mxu1 (!%p172_p3), %v733_v2  ;;  %v742_v8 = vld [vmem:[%s994_s1 + $0x44] ss:$8 sps:$4 sm:$0xff] (!%p172_p3)   ;;  %v744_v9 = vld [vmem:[%s994_s1 + $0x40] ss:$8 sps:$4 sm:$0xff] (!%p172_p3)   ;;  %v745_v10 = vld [vmem:[%s994_s1 + $0x54] ss:$8 sps:$4 sm:$0xff] (!%p172_p3)  }
   0xa   : > { %v747_v11 = vld [vmem:[%s994_s1 + $0x50] ss:$8 sps:$4 sm:$0xff] (!%p172_p3)   ;;  %v748_v12 = vld [vmem:[%s994_s1 + $0x64] ss:$8 sps:$4 sm:$0xff] (!%p172_p3)   ;;  %v750_v15 = vld [vmem:[%s994_s1 + $0x60] ss:$8 sps:$4 sm:$0xff] (!%p172_p3)  }
   0xb   : > { %v751_v17 = vld [vmem:[%s994_s1 + $0x74] ss:$8 sps:$4 sm:$0xff] (!%p172_p3)   ;;  %v753_v18 = vld [vmem:[%s994_s1 + $0x70] ss:$8 sps:$4 sm:$0xff] (!%p172_p3)   ;;  %v754_v19 = vld [vmem:[%s994_s1 + $0x84] ss:$8 sps:$4 sm:$0xff] (!%p172_p3)  }
   0xc   : > { %461 = vmatpush1.bf16.msra.mxu0 (!%p172_p3), %v735_v3  ;;  %689 = vmatpush1.bf16.msra.mxu1 (!%p172_p3), %v735_v3  ;;  %v756_v20 = vld [vmem:[%s994_s1 + $0x80] ss:$8 sps:$4 sm:$0xff] (!%p172_p3)   ;;  %v757_v21 = vld [vmem:[%s994_s1 + $0x94] ss:$8 sps:$4 sm:$0xff] (!%p172_p3)   ;;  %v759_v22 = vld [vmem:[%s994_s1 + $0x90] ss:$8 sps:$4 sm:$0xff] (!%p172_p3)  }
   0xd   : > { %462 = vmatprep.subr.bf16.mxu0 (!%p172_p3), %v736_v4  ;;  %674 = vmatprep.subr.bf16.mxu1 (!%p172_p3), %v736_v4  ;;  %v760_v23 = vld [vmem:[%s994_s1 + $0xa4] ss:$8 sps:$4 sm:$0xff] (!%p172_p3)   ;;  %v762_v24 = vld [vmem:[%s994_s1 + $0xa0] ss:$8 sps:$4 sm:$0xff] (!%p172_p3)   ;;  %v763_v25 = vld [vmem:[%s994_s1 + $0xb4] ss:$8 sps:$4 sm:$0xff] (!%p172_p3)  }
   0xe   : > { %s1002_s12 = smov (!%p212_p4, %s797_s12), 1  ;;  %v765_v26 = vld [vmem:[%s994_s1 + $0xb0] ss:$8 sps:$4 sm:$0xff]   ;;  %v766_v27 = vld [vmem:[%s994_s1 + $0xc4] ss:$8 sps:$4 sm:$0xff]  }
   0xf   : > { %s704_s9 = smul.u32 24, %s1002_s12  ;;  %v768_v28 = vld [vmem:[%s994_s1 + $0xc0] ss:$8 sps:$4 sm:$0xff]   ;;  %v769_v29 = vld [vmem:[%s994_s1 + $0xd4] ss:$8 sps:$4 sm:$0xff]  }
  0x10   : > { %463 = vmatpush1.bf16.msra.mxu0 %v738_v5  ;;  %690 = vmatpush1.bf16.msra.mxu1 %v738_v5  ;;  %v771_v30 = vld [vmem:[%s994_s1 + $0xd0] ss:$8 sps:$4 sm:$0xff]   ;;  %v772_v31 = vld [vmem:[%s994_s1 + $0xe4] ss:$8 sps:$4 sm:$0xff]   ;;  %v774_v32 = vld [vmem:[%s994_s1 + $0xe0] ss:$8 sps:$4 sm:$0xff]  }
  0x11   : > { %464 = vmatprep.subr.bf16.mxu0 %v739_v6  ;;  %675 = vmatprep.subr.bf16.mxu1 %v739_v6  ;;  %s891_s20 = scalar_lea.vmem %s993_s0, %s704_s9  ;;  %v775_v33 = vld [vmem:[%s994_s1 + $0xf4] ss:$8 sps:$4 sm:$0xff]   ;;  %v777_v34 = vld [vmem:[%s994_s1 + $0xf0] ss:$8 sps:$4 sm:$0xff]   ;;  %s705_s16 = smul.u32 48, %s1002_s12  ;;  %v275_v37 = vld [vmem:[%s995_s2] sm:$0xff] }
  0x12   : > { %v780_v13 = vld [vmem:[%s891_s20 + $0x4] ss:$8 sps:$4 sm:$0xff]   ;;  %v898_v14 = vld [vmem:[%s891_s20 + $0x10] sm:$0x11]  ;;  %v778_v35 = vld [vmem:[%s891_s20] ss:$8 sps:$4 sm:$0xff]  }
  0x13   : > { %v637_v16 = vcombine.high %v898_v14, %v898_v14  ;;  %490 = vmatprep.mubr.bf16.mxu0 %v780_v13  ;;  %v636_v36 = vcombine.low %v898_v14, %v898_v14  ;;  %v279_v38 = vld [vmem:[%s995_s2 + $0x20] sm:$0x1]  ;;  %v276_v39 = vld [vmem:[%s995_s2 + $0x8] sm:$0xff]  ;;  %s238_s12 = scalar_lea.vmem %s996_s3, %s705_s16  ;;  %v277_v43 = vld [vmem:[%s995_s2 + $0x10] sm:$0xff] }
  0x14   : > { %465 = vmatpush1.bf16.msra.mxu0 %v741_v7  ;;  %691 = vmatpush1.bf16.msra.mxu1 %v741_v7  ;;  %v280_v40 = vld [vmem:[%s995_s2 + $0x28] sm:$0x1]  ;;  %v278_v48 = vld [vmem:[%s995_s2 + $0x18] sm:$0xff] }
  0x15   : > { %466 = vmatprep.subr.bf16.mxu0 %v742_v8  ;;  %676 = vmatprep.subr.bf16.mxu1 %v742_v8 }
  0x16   : > { %500 = vmatprep.mubr.bf16.mxu1 %v637_v16 }
  0x18   : > { %467 = vmatpush1.bf16.msra.mxu0 %v744_v9  ;;  %692 = vmatpush1.bf16.msra.mxu1 %v744_v9 }
  0x19   : > { %468 = vmatprep.subr.bf16.mxu0 %v745_v10  ;;  %677 = vmatprep.subr.bf16.mxu1 %v745_v10 }
  0x1c   : > { %469 = vmatpush1.bf16.msra.mxu0 %v747_v11  ;;  %693 = vmatpush1.bf16.msra.mxu1 %v747_v11 }
  0x1d   : > { %470 = vmatprep.subr.bf16.mxu0 %v748_v12  ;;  %678 = vmatprep.subr.bf16.mxu1 %v748_v12 }
  0x20   : > { %471 = vmatpush1.bf16.msra.mxu0 %v750_v15  ;;  %694 = vmatpush1.bf16.msra.mxu1 %v750_v15 }
  0x21   : > { %472 = vmatprep.subr.bf16.mxu0 %v751_v17  ;;  %679 = vmatprep.subr.bf16.mxu1 %v751_v17 }
  0x24   : > { %473 = vmatpush1.bf16.msra.mxu0 %v753_v18  ;;  %695 = vmatpush1.bf16.msra.mxu1 %v753_v18 }
  0x25   : > { %474 = vmatprep.subr.bf16.mxu0 %v754_v19  ;;  %680 = vmatprep.subr.bf16.mxu1 %v754_v19 }
  0x28   : > { %475 = vmatpush1.bf16.msra.mxu0 %v756_v20  ;;  %696 = vmatpush1.bf16.msra.mxu1 %v756_v20 }
  0x29   : > { %476 = vmatprep.subr.bf16.mxu0 %v757_v21  ;;  %681 = vmatprep.subr.bf16.mxu1 %v757_v21 }
  0x2c   : > { %477 = vmatpush1.bf16.msra.mxu0 %v759_v22  ;;  %697 = vmatpush1.bf16.msra.mxu1 %v759_v22 }
  0x2d   : > { %478 = vmatprep.subr.bf16.mxu0 %v760_v23  ;;  %682 = vmatprep.subr.bf16.mxu1 %v760_v23 }
  0x30   : > { %479 = vmatpush1.bf16.msra.mxu0 %v762_v24  ;;  %698 = vmatpush1.bf16.msra.mxu1 %v762_v24 }
  0x31   : > { %480 = vmatprep.subr.bf16.mxu0 %v763_v25  ;;  %683 = vmatprep.subr.bf16.mxu1 %v763_v25 }
  0x34   : > { %481 = vmatpush1.bf16.msra.mxu0 %v765_v26  ;;  %699 = vmatpush1.bf16.msra.mxu1 %v765_v26 }
  0x35   : > { %482 = vmatprep.subr.bf16.mxu0 %v766_v27  ;;  %684 = vmatprep.subr.bf16.mxu1 %v766_v27 }
  0x38   : > { %483 = vmatpush1.bf16.msra.mxu0 %v768_v28  ;;  %700 = vmatpush1.bf16.msra.mxu1 %v768_v28 }
  0x39   : > { %484 = vmatprep.subr.bf16.mxu0 %v769_v29  ;;  %685 = vmatprep.subr.bf16.mxu1 %v769_v29 }
  0x3c   : > { %485 = vmatpush1.bf16.msra.mxu0 %v771_v30  ;;  %701 = vmatpush1.bf16.msra.mxu1 %v771_v30 }
  0x3d   : > { %486 = vmatprep.subr.bf16.mxu0 %v772_v31  ;;  %686 = vmatprep.subr.bf16.mxu1 %v772_v31 }
  0x40   : > { %487 = vmatpush1.bf16.msra.mxu0 %v774_v32  ;;  %702 = vmatpush1.bf16.msra.mxu1 %v774_v32 }
  0x41   : > { %488 = vmatprep.subr.bf16.mxu0 %v775_v33  ;;  %687 = vmatprep.subr.bf16.mxu1 %v775_v33 }
  0x44   : > { %489 = vmatpush1.bf16.msra.mxu0 %v777_v34  ;;  %703 = vmatpush1.bf16.msra.mxu1 %v777_v34 }
  0x47   : > { %491 = vmatmul.mubr.bf16.vlgmr.msra.gmra.mrb[0].mxu0 %v778_v35  ;;  %501 = vmatmul.mubr.bf16.vlgmr.msra.gmra.mrb[0].mxu1 %v636_v36 }
 0x11a   : > { %v492_v41 = vpop.f32.mrb[0].mxu0  ;;  %v502_v42 = vpop.f32.mrb[0].mxu1 }
 0x11b   : > { %v493_v44 = vadd.f32 %v492_v41, %v275_v37  ;;  %v503_v45 = vadd.f32 %v502_v42, %v279_v38  ;;  %v494_v46 = vpop.f32.mrb[1].mxu0  ;;  %v504_v47 = vpop.f32.mrb[1].mxu1 }
 0x11c   : > { %v495_v49 = vadd.f32 %v494_v46, %v276_v39  ;;  %v505_v50 = vadd.f32 %v504_v47, %v280_v40  ;;  %v496_v51 = vpop.f32.mrb[2].mxu0  ;;  %v506_v52 = vpop.f32.mrb[2].mxu1 }
 0x11d   : > { %509 = vst [vmem:[%s238_s12] sm:$0xff] %v493_v44  ;;  %513 = vst [vmem:[%s238_s12 + $0x20] sm:$0x1] %v503_v45  ;;  %v497_v53 = vadd.f32 %v496_v51, %v277_v43  ;;  %v498_v54 = vpop.f32.mrb[3].mxu0  ;;  %v507_v55 = vpop.f32.mrb[3].mxu1 }
 0x11e   : > { %510 = vst [vmem:[%s238_s12 + $0x8] sm:$0xff] %v495_v49  ;;  %514 = vst [vmem:[%s238_s12 + $0x28] sm:$0x1] %v505_v50  ;;  %v499_v56 = vadd.f32 %v498_v54, %v278_v48 }
 0x11f   : > { %511 = vst [vmem:[%s238_s12 + $0x10] sm:$0xff] %v497_v53 }
 0x120   : > { %512 = vst [vmem:[%s238_s12 + $0x18] sm:$0xff] %v499_v56 }
 0x121 PF: > { %s13_s14 = sadd.s32 1, %s805_s14   ;;  %s997_s12 = smov %s801_s13 }
 0x122   : > { %p10_p5 = scmp.ge.s32.totalorder %s13_s14, 4   ;;  %s998_s13 = smov %s1000_s15 }
 0x124   :  { %12 = sbr.rel (!%p10_p5) target bundleno = 2 (0x2), region = 65 }

</bundles_post_ra>
